<compile_context>
chip_gen: v5e
topology: v5e:2x2
jax: 0.10.0
libtpu: 0.0.40
codegen_flags: <defaults>
</compile_context>

<pallas_src>
import jax
import jax.numpy as jnp
from jax.experimental import pallas as pl
from jax.experimental.pallas import tpu as pltpu


def _learnable_margins_kernel(m1_ref, m2_ref, o1_ref, o2_ref):
    # m1_ref, m2_ref, o1_ref, o2_ref: SMEM f32[1]
    m1 = m1_ref[0]
    m2 = m2_ref[0]
    # torch.clamp(m1, min=0)
    o1_ref[0] = jnp.maximum(m1, jnp.float32(0.0))
    # torch.clamp(m2, min=m1 + 0.1)  -- uses the RAW m1, matching the PyTorch source
    o2_ref[0] = jnp.maximum(m2, m1 + jnp.float32(0.1))


def learnable_margins_forward(m1, m2):
    """m1, m2: scalar f32 parameters -> (clamped_m1, clamped_m2) scalars."""
    m1 = jnp.asarray(m1, jnp.float32).reshape((1,))
    m2 = jnp.asarray(m2, jnp.float32).reshape((1,))
    out1, out2 = pl.pallas_call(
        _learnable_margins_kernel,
        out_shape=(
            jax.ShapeDtypeStruct((1,), jnp.float32),
            jax.ShapeDtypeStruct((1,), jnp.float32),
        ),
        in_specs=[
            pl.BlockSpec(memory_space=pltpu.SMEM),
            pl.BlockSpec(memory_space=pltpu.SMEM),
        ],
        out_specs=(
            pl.BlockSpec(memory_space=pltpu.SMEM),
            pl.BlockSpec(memory_space=pltpu.SMEM),
        ),
    )(m1, m2)
    return out1[0], out2[0]


def _reference(m1, m2):
    m1 = jnp.asarray(m1, jnp.float32)
    m2 = jnp.asarray(m2, jnp.float32)
    return jnp.maximum(m1, 0.0), jnp.maximum(m2, m1 + 0.1)


if __name__ == "__main__":
    key = jax.random.PRNGKey(0)
    k1, k2 = jax.random.split(key)

    test_cases = [
        # PyTorch default init: m1=0.0, m2=0.6  (both clamps inactive)
        (jnp.float32(0.0), jnp.float32(0.6)),
        # deterministic random parameter values (post-training-like state)
        (jax.random.normal(k1, (), jnp.float32),
         jax.random.normal(k2, (), jnp.float32)),
        # both clamps active: m1 < 0 and m2 < m1 + 0.1
        (jnp.float32(-1.3), jnp.float32(-2.0)),
    ]

    for m1, m2 in test_cases:
        out1, out2 = learnable_margins_forward(m1, m2)
        out1, out2 = jax.block_until_ready((out1, out2))
        ref1, ref2 = _reference(m1, m2)
        assert out1.shape == () and out2.shape == ()
        assert jnp.allclose(out1, ref1, atol=1e-6, rtol=1e-6), (out1, ref1)
        assert jnp.allclose(out2, ref2, atol=1e-6, rtol=1e-6), (out2, ref2)

    print("KERNEL_OK")
</pallas_src>

<mosaic_0001>
module attributes {stable_mosaic.version = 11 : i64} {
  func.func @_learnable_margins_kernel(%arg0: memref<1xf32, #tpu.memory_space<smem>>, %arg1: memref<1xf32, #tpu.memory_space<smem>>, %arg2: memref<1xf32, #tpu.memory_space<smem>>, %arg3: memref<1xf32, #tpu.memory_space<smem>>) attributes {dimension_semantics = [], scalar_prefetch = 0 : i64, scratch_operands = 0 : i64, tpu.core_type = #tpu.core_type<tc>} {
    %c0 = arith.constant 0 : index
    %0 = memref.load %arg0[%c0] : memref<1xf32, #tpu.memory_space<smem>>
    %c0_0 = arith.constant 0 : index
    %1 = memref.load %arg1[%c0_0] : memref<1xf32, #tpu.memory_space<smem>>
    %cst = arith.constant 0.000000e+00 : f32
    %2 = arith.maximumf %0, %cst : f32
    %c0_1 = arith.constant 0 : index
    %3 = memref.load %arg2[%c0_1] : memref<1xf32, #tpu.memory_space<smem>>
    memref.store %2, %arg2[%c0_1] : memref<1xf32, #tpu.memory_space<smem>>
    %cst_2 = arith.constant 1.000000e-01 : f32
    %4 = arith.addf %0, %cst_2 : f32
    %5 = arith.maximumf %1, %4 : f32
    %c0_3 = arith.constant 0 : index
    %6 = memref.load %arg3[%c0_3] : memref<1xf32, #tpu.memory_space<smem>>
    memref.store %5, %arg3[%c0_3] : memref<1xf32, #tpu.memory_space<smem>>
    return
  }
}

</mosaic_0001>

<bundles_post_ra>
// kernel: tpu_custom_call.1
= control target key start
LH: loop header
LB: loop body
LE: loop exit
PB: predicated region body
PF: predicated region fallthrough
CT: control target
= control target key end

     0   :  { %11 = vsyncpa [#allocation5], 0  ;;  %s124_s0 = inlined_call_operand.<no memory space> [shape: f32[1], index: 0, kind: input, shape index: {}]   ;;  %s125_s1 = inlined_call_operand.<no memory space> [shape: f32[1], index: 1, kind: input, shape index: {}]   ;;  %s126_s2 = inlined_call_operand.hbm [shape: f32[1], index: 2, kind: output, shape index: {0}]   ;;  %s127_s3 = inlined_call_operand.hbm [shape: f32[1], index: 3, kind: output, shape index: {1}]  }
   0x1   :  { %s31_s14 = sshll.u32 %s126_s2, 4  ;;  %s32_s14 = int_to_ptr.hbm [resolvable:$true] %s31_s14 }
   0x2   :  { %12 = vsyncpa [#allocation7], 0  ;;  %s86_s15 = smov 0.0   ;;  %s87_s19 = smov [#allocation4]  }
   0x3   :  { %s19_s18 = smax.f32 %s86_s15, %s124_s0  ;;  %s22_s22 = sadd.f32 0.1, %s124_s0 }
   0x4   :  { %21 = sst [smem:[#allocation4]] %s19_s18  ;;  %s40_s25 = sshll.u32 %s127_s3, 4  ;;  %s41_s25 = int_to_ptr.hbm [resolvable:$true] %s40_s25 }
   0x5   :  { %34 = dma.smem_to_hbm %s87_s19, 16, %s32_s14, [#allocation5]  }
   0x6   :  { %s23_s27 = smax.f32 %s22_s22, %s125_s1  ;;  %s88_s28 = smov [#allocation6]  }
   0x7   :  { %25 = sst [smem:[#allocation6]] %s23_s27 }
   0x8   :  { %43 = dma.smem_to_hbm %s88_s28, 16, %s41_s25, [#allocation7]  }
   0x9   :  { %82 = dma.done.wait [#allocation5], 16  }
   0xa   :  { %83 = vsyncadd [#allocation5], 4294967280 }
   0xb   :  { %84 = dma.done.wait [#allocation7], 16  }
   0xc   :  { %85 = vsyncadd [#allocation7], 4294967280 }
   0xd   :  { %52 = sfence }
   0xe   :  { %53 = vsyncpa [#allocation5], 1 }
   0xf   :  { %54 = vsyncpa [#allocation7], 1 }

</bundles_post_ra>
